<compile_context>
chip_gen: v6e
topology: v6e:2x2x1
jax: 0.10.0
libtpu: 0.0.40
codegen_flags: <defaults>
</compile_context>

<pallas_src>
import functools

import jax
import jax.numpy as jnp
from jax.experimental import pallas as pl
from jax.experimental.pallas import tpu as pltpu


def _round_up(a: int, b: int) -> int:
    return (a + b - 1) // b * b


def _vmem_plan():
    """Return (double-buffer budget bytes, vmem_limit_bytes) per TPU generation."""
    cap = 64 * 1024 * 1024
    try:
        cap = int(getattr(pltpu.get_tpu_info(), "vmem_capacity_bytes", cap))
    except Exception:
        pass
    if cap >= 100 * 1024 * 1024:
        # v5e / v6e: 128 MiB physical VMEM -> larger tiles amortize per-step cost.
        return 32 * 1024 * 1024, 80 * 1024 * 1024
    # v7x: 64 MiB physical / 32 MiB scoped default.
    return 12 * 1024 * 1024, 32 * 1024 * 1024


def _choose_row_tile(n_rows: int, l_in: int, l_out: int, itemsize: int,
                     budget: int) -> int:
    if n_rows < 8:
        return n_rows                      # single full-dim row block (legal)
    # Double-buffered input (TR, L) + output (TR, L_out) blocks.
    bytes_per_row = 2 * (l_in + l_out) * itemsize
    tr = max(8, budget // bytes_per_row)
    tr = (tr // 8) * 8                     # sublane multiple
    # Keep >= ~4 grid steps when the row count allows it so the "parallel" row
    # axis can shard across TensorCores (v7x has 2 TCs); harmless on v5e/v6e.
    tr = min(tr, max(8, _round_up(-(-n_rows // 4), 8)))
    return max(tr, 8)


def _conv1d_kernel(w_ref, x_ref, o_ref, *, l, l_out):
    # w_ref: (l,)        f32 filter taps in SMEM (each read once).
    # x_ref: (TR, L)     input block in VMEM (input dtype).
    # o_ref: (TR, L_out) output block in VMEM (input dtype).
    acc = x_ref[:, pl.ds(0, l_out)].astype(jnp.float32) * w_ref[0]
    for k in range(1, l):                  # static unroll; l is small
        acc = acc + x_ref[:, pl.ds(k, l_out)].astype(jnp.float32) * w_ref[k]
    o_ref[...] = acc.astype(o_ref.dtype)


def conv1d_pallas(x, weight):
    """x: (B, C, L), weight: (1, l, 1) -> (B, C, L - l + 1) in x.dtype."""
    B, C, L = x.shape
    l = weight.shape[1]
    assert 1 <= l <= L, (l, L)
    l_out = L - l + 1
    R = B * C

    x2 = x.reshape(R, L)                          # free reshape: no pad, no cast
    w1 = weight.reshape(l).astype(jnp.float32)    # tiny; lives in SMEM

    budget, vmem_limit = _vmem_plan()
    itemsize = jnp.dtype(x.dtype).itemsize
    tr = _choose_row_tile(R, L, l_out, itemsize, budget)

    kernel = functools.partial(_conv1d_kernel, l=l, l_out=l_out)
    out = pl.pallas_call(
        kernel,
        out_shape=jax.ShapeDtypeStruct((R, l_out), x.dtype),
        grid=(pl.cdiv(R, tr),),
        in_specs=[
            pl.BlockSpec(memory_space=pltpu.MemorySpace.SMEM),   # taps (whole array)
            pl.BlockSpec((tr, L), lambda i: (i, 0)),             # row tile of x
        ],
        out_specs=pl.BlockSpec((tr, l_out), lambda i: (i, 0)),
        compiler_params=pltpu.CompilerParams(
            dimension_semantics=("parallel",),    # rows independent (2 TCs on v7x)
            vmem_limit_bytes=vmem_limit,
        ),
    )(w1, x2)
    return out.reshape(B, C, l_out)


def conv1d_reference(x, weight):
    # Pure-JAX reference mirroring the PyTorch loop exactly.
    B, C, L = x.shape
    l = weight.shape[1]
    w = weight.reshape(l).astype(x.dtype)
    cols = [
        jnp.einsum("bcl,l->bc", x[:, :, i:i + l], w)[:, :, None]
        for i in range(L - l + 1)
    ]
    return jnp.concatenate(cols, axis=2)


if __name__ == "__main__":
    key = jax.random.PRNGKey(0)
    kx, kw, kx2, kw2, kx3, kw3 = jax.random.split(key, 6)

    # Case 1: small shapes consistent with the module (batch, channels, length).
    B, C, L, l = 2, 4, 16, 4
    x = jax.random.normal(kx, (B, C, L), dtype=jnp.float32)
    weight = jax.random.uniform(kw, (1, l, 1), dtype=jnp.float32)  # torch uniform_ -> U(0,1)
    out = jax.block_until_ready(conv1d_pallas(x, weight))
    ref = conv1d_reference(x, weight)
    assert out.shape == (B, C, L - l + 1), out.shape
    assert out.dtype == x.dtype
    assert jnp.allclose(out, ref, atol=1e-5, rtol=1e-5), "mismatch vs reference (case 1)"

    # Case 2: B*C < 8 (full-dim row block) and L > 128, not a multiple of 128
    # (exercises the masked tail store).
    B2, C2, L2, l2 = 2, 3, 130, 5
    x_b = jax.random.normal(kx2, (B2, C2, L2), dtype=jnp.float32)
    w_b = jax.random.uniform(kw2, (1, l2, 1), dtype=jnp.float32)
    out_b = jax.block_until_ready(conv1d_pallas(x_b, w_b))
    ref_b = conv1d_reference(x_b, w_b)
    assert out_b.shape == (B2, C2, L2 - l2 + 1), out_b.shape
    assert jnp.allclose(out_b, ref_b, atol=1e-5, rtol=1e-5), "mismatch vs reference (case 2)"

    # Case 3: B*C = 12 -> 2 grid steps with a partial boundary row block
    # (no host-side row padding; Pallas masks the out-of-bounds rows).
    B3, C3, L3, l3 = 3, 4, 40, 7
    x_c = jax.random.normal(kx3, (B3, C3, L3), dtype=jnp.float32)
    w_c = jax.random.uniform(kw3, (1, l3, 1), dtype=jnp.float32)
    out_c = jax.block_until_ready(conv1d_pallas(x_c, w_c))
    ref_c = conv1d_reference(x_c, w_c)
    assert out_c.shape == (B3, C3, L3 - l3 + 1), out_c.shape
    assert jnp.allclose(out_c, ref_c, atol=1e-5, rtol=1e-5), "mismatch vs reference (case 3)"

    print("KERNEL_OK")
</pallas_src>

<mosaic_0001>
module attributes {stable_mosaic.version = 11 : i64} {
  func.func @_conv1d_kernel(%arg0: i32, %arg1: memref<4xf32, #tpu.memory_space<smem>>, %arg2: memref<8x16xf32, #tpu.memory_space<vmem>>, %arg3: memref<8x13xf32, #tpu.memory_space<vmem>>) attributes {dimension_semantics = [#tpu.dimension_semantics<parallel>], iteration_bounds = array<i64: 1>, scalar_prefetch = 0 : i64, scratch_operands = 0 : i64, tpu.core_type = #tpu.core_type<tc>, window_params = [{transform_indices = @transform_0, window_bounds = array<i64: 4>}, {transform_indices = @transform_1, window_bounds = array<i64: 8, 16>}, {transform_indices = @transform_2, window_bounds = array<i64: 8, 13>}]} {
    %c0 = arith.constant 0 : index
    %c0_0 = arith.constant 0 : index
    %0 = vector.load %arg2[%c0, %c0_0] : memref<8x16xf32, #tpu.memory_space<vmem>>, vector<8x13xf32>
    %c0_1 = arith.constant 0 : index
    %1 = memref.load %arg1[%c0_1] : memref<4xf32, #tpu.memory_space<smem>>
    %2 = vector.broadcast %1 : f32 to vector<8x13xf32>
    %3 = arith.mulf %0, %2 : vector<8x13xf32>
    %c0_2 = arith.constant 0 : index
    %c1 = arith.constant 1 : index
    %4 = vector.load %arg2[%c0_2, %c1] : memref<8x16xf32, #tpu.memory_space<vmem>>, vector<8x13xf32>
    %c1_3 = arith.constant 1 : index
    %5 = memref.load %arg1[%c1_3] : memref<4xf32, #tpu.memory_space<smem>>
    %6 = vector.broadcast %5 : f32 to vector<8x13xf32>
    %7 = arith.mulf %4, %6 : vector<8x13xf32>
    %8 = arith.addf %3, %7 : vector<8x13xf32>
    %c0_4 = arith.constant 0 : index
    %c2 = arith.constant 2 : index
    %9 = vector.load %arg2[%c0_4, %c2] : memref<8x16xf32, #tpu.memory_space<vmem>>, vector<8x13xf32>
    %c2_5 = arith.constant 2 : index
    %10 = memref.load %arg1[%c2_5] : memref<4xf32, #tpu.memory_space<smem>>
    %11 = vector.broadcast %10 : f32 to vector<8x13xf32>
    %12 = arith.mulf %9, %11 : vector<8x13xf32>
    %13 = arith.addf %8, %12 : vector<8x13xf32>
    %c0_6 = arith.constant 0 : index
    %c3 = arith.constant 3 : index
    %14 = vector.load %arg2[%c0_6, %c3] : memref<8x16xf32, #tpu.memory_space<vmem>>, vector<8x13xf32>
    %c3_7 = arith.constant 3 : index
    %15 = memref.load %arg1[%c3_7] : memref<4xf32, #tpu.memory_space<smem>>
    %16 = vector.broadcast %15 : f32 to vector<8x13xf32>
    %17 = arith.mulf %14, %16 : vector<8x13xf32>
    %18 = arith.addf %13, %17 : vector<8x13xf32>
    %c0_8 = arith.constant 0 : index
    %c0_9 = arith.constant 0 : index
    %19 = vector.load %arg3[%c0_8, %c0_9] : memref<8x13xf32, #tpu.memory_space<vmem>>, vector<8x13xf32>
    tpu.vector_store %arg3[%c0_8, %c0_9], %18 {strides = array<i32>} : memref<8x13xf32, #tpu.memory_space<vmem>>, vector<8x13xf32>,
    return
  }
  func.func @transform_0(%arg0: i32) -> i32 {
    %c0_i32 = arith.constant 0 : i32
    %c0_i32_0 = arith.constant 0 : i32
    return %c0_i32 : i32
  }
  func.func @transform_1(%arg0: i32) -> (i32, i32) {
    %c0_i32 = arith.constant 0 : i32
    %c0_i32_0 = arith.constant 0 : i32
    return %arg0, %c0_i32 : i32, i32
  }
  func.func @transform_2(%arg0: i32) -> (i32, i32) {
    %c0_i32 = arith.constant 0 : i32
    %c0_i32_0 = arith.constant 0 : i32
    return %arg0, %c0_i32 : i32, i32
  }
}

</mosaic_0001>

<bundles_post_ra>
// kernel: tpu_custom_call.1
= control target key start
LH: loop header
LB: loop body
LE: loop exit
PB: predicated region body
PF: predicated region fallthrough
CT: control target
= control target key end

     0   :  { %7 = vsyncpa [#allocation5], 0  ;;  %s174_s0 = inlined_call_operand.hbm [shape: f32[4], index: 0, kind: input, shape index: {}]   ;;  %s175_s1 = inlined_call_operand.hbm [shape: f32[8,16], index: 1, kind: input, shape index: {}]   ;;  %s176_s2 = inlined_call_operand.hbm [shape: f32[8,13], index: 2, kind: output, shape index: {}]  }
   0x1   :  { %8 = vsyncpa [#allocation3], 0 }
   0x2   :  { %9 = vsyncpa [#allocation4], 0  ;;  %s144_s9 = smov [#allocation2]   ;;  %s145_s12 = smov [#allocation6]  }
   0x3   :  { %17 = dma.hbm_to_smem %s174_s0, 16, %s144_s9, [#allocation5]  }
   0x4   :  { %s24_s13 = sshll.u32 %s145_s12, 4  ;;  %s25_s13 = int_to_ptr.vmem [resolvable:$true] %s24_s13 }
   0x5   :  { %s106_s14 = scalar_lea.vmem %s25_s13, 128  ;;  %p111_p1 = scmp.lt.s32.totalorder %s25_s13, %s25_s13 }
   0x6   :  { %p107_p0 = scmp.ne.s32.totalorder %s25_s13, %s106_s14  ;;  %p112_p2 = scmp.lt.s32.totalorder %s106_s14, %s106_s14 }
   0x8   :  { %p113_p3 = por %p112_p2, %p111_p1 }
   0xa   :  { %p114_p4 = pnand %p113_p3, %p107_p0 }
   0xc   :  { %117 = shalt.err (!%p114_p4)
}
   0xd   :  { %27 = dma.hbm_to_vmem [thread:$0]  %s175_s1, 128, %s25_s13, [#allocation3]  }
   0xe   :  { %138 = dma.done.wait [#allocation5], 16  }
   0xf   :  { %139 = vsyncadd [#allocation5], 4294967280 }
  0x10   :  { %140 = dma.done.wait [#allocation3], 128  }
  0x11   :  { %141 = vsyncadd [#allocation3], 4294967168 }
  0x12   :  { %34 = sfence }
  0x13   :  { %s81_s0 = sld [smem:[#allocation2 + $0x1]]  ;;  %v35_v0 = vld [vmem:[#allocation6] sm:$0xff]  ;;  %s146_s19 = smov 127   ;;  %vm63_vm0 = vcmask 105472  }
  0x14   :  { %s82_s17 = sld [smem:[#allocation2 + $0x2]]  ;;  %s147_s20 = smov 125  }
  0x15   :  { %s83_s18 = sld [smem:[#allocation2 + $0x3]]  ;;  %s148_s1 = smov 126  }
  0x16   :  { %s36_s21 = sld [smem:[#allocation2]]  ;;  %s149_s22 = smov [#allocation7]  }
  0x17   :  { %s71_s23 = sshll.u32 %s149_s22, 4  ;;  %s72_s23 = int_to_ptr.vmem [resolvable:$true] %s71_s23 }
  0x18   :  { %s118_s24 = scalar_lea.vmem %s72_s23, 128  ;;  %p123_p6 = scmp.lt.s32.totalorder %s72_s23, %s72_s23 }
  0x19   :  { %v40_v1 = vstv %s81_s0  ;;  %p119_p5 = scmp.ne.s32.totalorder %s72_s23, %s118_s24  ;;  %p124_p7 = scmp.lt.s32.totalorder %s118_s24, %s118_s24 }
  0x1a   :  { %v41_v2 = vmul.f32 %v40_v1, %v35_v0  ;;  %v48_v3 = vstv %s82_s17 }
  0x1b   :  { %v56_v4 = vstv %s83_s18  ;;  %v49_v5 = vmul.f32 %v48_v3, %v35_v0  ;;  %p125_p8 = por %p124_p7, %p123_p6 }
  0x1c   :  { %43 = vrot.lane.b32.xlu0 %v41_v2, %s146_s19  ;;  %v57_v6 = vmul.f32 %v56_v4, %v35_v0  ;;  %v37_v7 = vstv %s36_s21 }
  0x1d   :  { %v38_v8 = vmul.f32 %v37_v7, %v35_v0  ;;  %p126_p9 = pnand %p125_p8, %p119_p5 }
  0x1e   :  { %59 = vrot.lane.b32.xlu1 %v57_v6, %s147_s20 }
  0x20   :  { %51 = vrot.lane.b32.xlu0 %v49_v5, %s148_s1 }
  0x8e   :  { %v44_v9 = vpop.permute.xlu0 %43 }
  0x8f   :  { %v46_v10 = vadd.f32 %v44_v9, %v38_v8 }
  0x90   :  { %v60_v12 = vpop.permute.xlu1 %59 }
  0x92   :  { %v52_v11 = vpop.permute.xlu0 %51 }
  0x93   :  { %v54_v13 = vadd.f32 %v52_v11, %v46_v10 }
  0x95   :  { %v62_v14 = vadd.f32 %v60_v12, %v54_v13 }
  0x97   :  { %64 = vst.msk [vmem:[#allocation7] sm:$0xff] %vm63_vm0, %v62_v14 }
  0x98   :  { %129 = shalt.err (!%p126_p9)
}
  0x99   :  { %74 = dma.vmem_to_hbm [thread:$0]  %s72_s23, 128, %s176_s2, [#allocation4]  }
  0x9a   :  { %142 = dma.done.wait [#allocation4], 128  }
  0x9b   :  { %143 = vsyncadd [#allocation4], 4294967168 }
  0x9c   :  { %78 = vsyncpa [#allocation3], 1 }
  0x9d   :  { %79 = vsyncpa [#allocation4], 1 }
  0x9e   :  { %80 = vsyncpa [#allocation5], 1 }

</bundles_post_ra>
